<compile_context>
chip_gen: v7x
topology: tpu7x:2x2x1
jax: 0.10.0
libtpu: 0.0.40
codegen_flags: <defaults>
</compile_context>

<pallas_src>
import jax
import jax.numpy as jnp
from jax.experimental import pallas as pl
from jax.experimental.pallas import tpu as pltpu


def _make_tv_kernel(N, L, W, n_tile):
    """Kernel over one (n_tile, L) slab; writes one (1, 8, 128) partial block."""
    need_row_mask = (N % n_tile) != 0

    def tv_kernel(x_ref, mask_h_ref, mask_w_ref, out_ref):
        x = x_ref[...].astype(jnp.float32)

        if need_row_mask:
            # Rows past N in the last tile hold undefined pad data: zero them.
            # A zero row contributes 0 to both sums because the lane rolls
            # below never mix rows.
            row = jax.lax.broadcasted_iota(jnp.int32, (n_tile, L), 0)
            x = jnp.where(row + pl.program_id(0) * n_tile < N, x, 0.0)

        # Flattened index i = h*W + w.  roll(shift=L-W)[i] == x[(i+W) % L] is
        # the +1 shift along H; roll(shift=L-1)[i] == x[(i+1) % L] is the +1
        # shift along W.  Wrap-around positions are killed by the masks; the
        # masked values are finite (same-row data), so a multiply is exact.
        mask_h = mask_h_ref[...]          # (1, L) f32: 0 where i >= (H-1)*W
        mask_w = mask_w_ref[...]          # (1, L) f32: 0 where (i % W) == W-1
        h_sum = jnp.sum(jnp.square(pltpu.roll(x, shift=L - W, axis=1) - x) * mask_h)
        w_sum = jnp.sum(jnp.square(pltpu.roll(x, shift=L - 1, axis=1) - x) * mask_w)

        # Lane-dense (8, 128) output block: lane 0 = h partial, lane 1 = w.
        lane = jax.lax.broadcasted_iota(jnp.int32, (8, 128), 1)
        out_ref[0] = jnp.where(lane == 0, h_sum,
                               jnp.where(lane == 1, w_sum, 0.0))

    return tv_kernel


def _budgets():
    """(per-tile f32 byte target, scoped-VMEM limit) per TPU generation."""
    vmem_cap = None
    try:
        vmem_cap = int(pltpu.get_tpu_info().vmem_capacity_bytes)
    except Exception:
        vmem_cap = None
    if vmem_cap is not None and vmem_cap > 64 * 1024 * 1024:
        # v5e / v6e: 128 MiB physical VMEM -> larger tiles, generous limit.
        return 6 * 1024 * 1024, 64 * 1024 * 1024
    # v7x (64 MiB / TensorCore) or unknown: the kernel's f32 temporaries are a
    # few x the tile, so keep the per-step footprint small and the limit tight.
    return 3 * 1024 * 1024, 40 * 1024 * 1024


def _pick_n_tile(N, L, target_bytes):
    """Rows per grid step; multiple of 8 (sublane rule) unless it is all of N."""
    rows = max(1, target_bytes // max(1, L * 4))      # budget in f32 terms
    if rows >= N:
        if N < 16:
            return N                                  # single full-extent tile
        rows = -(-N // 2)                             # >= 2 steps for megacore
    rows = max(8, (rows // 8) * 8)
    return min(rows, ((N + 7) // 8) * 8)


def _input_block_spec(n_tile, L, deep_buffer):
    index_map = lambda i: (i, 0)
    if deep_buffer:
        try:   # deeper pipelining hides DMA issue latency for many small tiles
            return pl.BlockSpec((n_tile, L), index_map,
                                pipeline_mode=pl.Buffered(3))
        except TypeError:
            pass
    return pl.BlockSpec((n_tile, L), index_map)


def _tv_loss_xla(x, tv_weight):
    """Plain-XLA reference / fallback (mirrors the PyTorch module)."""
    B, C, H, W = x.shape
    xf = x.astype(jnp.float32)
    count_h = C * (H - 1) * W
    count_w = C * H * (W - 1)
    h_tv = jnp.sum(jnp.square(xf[:, :, 1:, :] - xf[:, :, :H - 1, :]))
    w_tv = jnp.sum(jnp.square(xf[:, :, :, 1:] - xf[:, :, :, :W - 1]))
    return tv_weight * 2.0 * (h_tv / count_h + w_tv / count_w) / B


def tv_loss(x, tv_weight=1.0):
    """Pallas implementation of TVLoss.forward (x is NCHW).

    Like the PyTorch original, H == 1 or W == 1 yields a 0/0 (NaN) result.
    """
    B, C, H, W = x.shape
    L = H * W
    N = B * C
    itemsize = jnp.dtype(x.dtype).itemsize

    target_bytes, vmem_limit = _budgets()

    # TODO(synk): add spatial tiling of the flattened axis with a W-element
    # carry so that huge single planes (one 8-row slab + its f32 temporaries
    # exceeding VMEM) also stay in Pallas instead of the XLA fallback.
    if min(N, 8) * L * 4 * 6 > vmem_limit:
        return _tv_loss_xla(x, tv_weight)

    n_tile = _pick_n_tile(N, L, target_bytes)
    num_tiles = pl.cdiv(N, n_tile)

    # Lane-dense layout: flatten the spatial dims onto the lane axis (metadata
    # reshape only; the input stays in its native dtype for the DMA).
    x_flat = x.reshape(N, L)

    # Wrap-around masks for the two in-kernel lane rolls.  Their block index
    # never changes, so Pallas DMAs them once and reuses them every step.
    idx = jnp.arange(L, dtype=jnp.int32)
    mask_h = (idx < (H - 1) * W).astype(jnp.float32).reshape(1, L)
    mask_w = ((idx % W) != (W - 1)).astype(jnp.float32).reshape(1, L)

    tile_bytes = n_tile * L * itemsize
    deep_buffer = (tile_bytes < (1 << 20)) and (num_tiles >= 4)

    kernel = _make_tv_kernel(N, L, W, n_tile)
    partials = pl.pallas_call(
        kernel,
        out_shape=jax.ShapeDtypeStruct((num_tiles, 8, 128), jnp.float32),
        grid_spec=pltpu.PrefetchScalarGridSpec(
            num_scalar_prefetch=0,
            grid=(num_tiles,),
            in_specs=[_input_block_spec(n_tile, L, deep_buffer),
                      pl.BlockSpec((1, L), lambda i: (0, 0)),
                      pl.BlockSpec((1, L), lambda i: (0, 0))],
            out_specs=pl.BlockSpec((1, 8, 128), lambda i: (i, 0, 0)),
        ),
        compiler_params=pltpu.CompilerParams(
            dimension_semantics=("parallel",),
            vmem_limit_bytes=vmem_limit,
        ),
        cost_estimate=pl.CostEstimate(
            flops=8 * N * L,
            transcendentals=0,
            bytes_accessed=N * L * itemsize + 2 * L * 4 + num_tiles * 8 * 128 * 4,
        ),
    )(x_flat, mask_h, mask_w)

    # Tiny final combine in plain JAX (num_tiles scalars each).
    h_tv = jnp.sum(partials[:, 0, 0])
    w_tv = jnp.sum(partials[:, 0, 1])
    count_h = C * (H - 1) * W
    count_w = C * H * (W - 1)
    return tv_weight * 2.0 * (h_tv / count_h + w_tv / count_w) / B


def tv_loss_ref(x, tv_weight=1.0):
    return _tv_loss_xla(x, tv_weight)


if __name__ == "__main__":
    key = jax.random.PRNGKey(0)
    k0, k1, k2 = jax.random.split(key, 3)

    # Main case (typical NCHW usage of the module).
    x0 = jax.random.normal(k0, (2, 4, 16, 16), dtype=jnp.float32)
    out0 = jax.block_until_ready(tv_loss(x0, tv_weight=1.0))
    ref0 = tv_loss_ref(x0, tv_weight=1.0)
    assert jnp.allclose(out0, ref0, rtol=1e-5, atol=1e-5), (out0, ref0)

    # Awkward shape: odd channel count, B*C (=21) not a multiple of the row
    # tile -> exercises the remainder-row mask, non-square H != W, W % 128 != 0.
    x1 = jax.random.normal(k1, (3, 7, 8, 16), dtype=jnp.float32)
    out1 = jax.block_until_ready(tv_loss(x1, tv_weight=0.5))
    ref1 = tv_loss_ref(x1, tv_weight=0.5)
    assert jnp.allclose(out1, ref1, rtol=1e-5, atol=1e-5), (out1, ref1)

    # bf16 input stays bf16 across the DMA; accumulation is f32 in-kernel.
    x2 = jax.random.normal(k2, (2, 4, 16, 16), dtype=jnp.bfloat16)
    out2 = jax.block_until_ready(tv_loss(x2, tv_weight=1.0))
    ref2 = tv_loss_ref(x2, tv_weight=1.0)
    assert jnp.allclose(out2, ref2, rtol=1e-4, atol=1e-4), (out2, ref2)

    print("KERNEL_OK")
</pallas_src>

<mosaic_0001>
module attributes {stable_mosaic.version = 11 : i64} {
  func.func @tv_kernel(%arg0: i32, %arg1: memref<8x256xf32, #tpu.memory_space<vmem>>, %arg2: memref<1x256xf32, #tpu.memory_space<vmem>>, %arg3: memref<1x256xf32, #tpu.memory_space<vmem>>, %arg4: memref<1x8x128xf32, #tpu.memory_space<vmem>>) attributes {dimension_semantics = [#tpu.dimension_semantics<parallel>], iteration_bounds = array<i64: 1>, scalar_prefetch = 0 : i64, scratch_operands = 0 : i64, tpu.core_type = #tpu.core_type<tc>, window_params = [{transform_indices = @transform_0, window_bounds = array<i64: 8, 256>}, {pipeline_mode = #tpu.pipeline_mode<synchronous>, transform_indices = @transform_1, window_bounds = array<i64: 1, 256>}, {pipeline_mode = #tpu.pipeline_mode<synchronous>, transform_indices = @transform_2, window_bounds = array<i64: 1, 256>}, {transform_indices = @transform_3, window_bounds = array<i64: 1, 8, 128>}]} {
    %c0 = arith.constant 0 : index
    %c0_0 = arith.constant 0 : index
    %0 = vector.load %arg1[%c0, %c0_0] : memref<8x256xf32, #tpu.memory_space<vmem>>, vector<8x256xf32>
    %c0_1 = arith.constant 0 : index
    %c0_2 = arith.constant 0 : index
    %1 = vector.load %arg2[%c0_1, %c0_2] : memref<1x256xf32, #tpu.memory_space<vmem>>, vector<1x256xf32>
    %c0_3 = arith.constant 0 : index
    %c0_4 = arith.constant 0 : index
    %2 = vector.load %arg3[%c0_3, %c0_4] : memref<1x256xf32, #tpu.memory_space<vmem>>, vector<1x256xf32>
    %c240_i32 = arith.constant 240 : i32
    %3 = tpu.dynamic_rotate %0 by %c240_i32 dim 1 : vector<8x256xf32>, i32 -> vector<8x256xf32>
    %4 = arith.subf %3, %0 : vector<8x256xf32>
    %5 = arith.mulf %4, %4 : vector<8x256xf32>
    %6 = vector.broadcast %1 : vector<1x256xf32> to vector<8x256xf32>
    %7 = arith.mulf %5, %6 : vector<8x256xf32>
    %8 = vector.shape_cast %7 : vector<8x256xf32> to vector<1x8x256xf32>
    %cst = arith.constant dense<0.000000e+00> : vector<1xf32>
    %9 = vector.multi_reduction <add>, %8, %cst [1, 2] : vector<1x8x256xf32> to vector<1xf32>
    %10 = vector.shape_cast %9 : vector<1xf32> to vector<1x1x1xf32>
    %11 = vector.extract %10[0, 0, 0] : f32 from vector<1x1x1xf32>
    %c255_i32 = arith.constant 255 : i32
    %12 = tpu.dynamic_rotate %0 by %c255_i32 dim 1 : vector<8x256xf32>, i32 -> vector<8x256xf32>
    %13 = arith.subf %12, %0 : vector<8x256xf32>
    %14 = arith.mulf %13, %13 : vector<8x256xf32>
    %15 = vector.broadcast %2 : vector<1x256xf32> to vector<8x256xf32>
    %16 = arith.mulf %14, %15 : vector<8x256xf32>
    %17 = vector.shape_cast %16 : vector<8x256xf32> to vector<1x8x256xf32>
    %cst_5 = arith.constant dense<0.000000e+00> : vector<1xf32>
    %18 = vector.multi_reduction <add>, %17, %cst_5 [1, 2] : vector<1x8x256xf32> to vector<1xf32>
    %19 = vector.shape_cast %18 : vector<1xf32> to vector<1x1x1xf32>
    %20 = vector.extract %19[0, 0, 0] : f32 from vector<1x1x1xf32>
    %21 = tpu.iota {dimensions = array<i32: 1>} : vector<8x128xi32>
    %c0_i32 = arith.constant 0 : i32
    %22 = vector.broadcast %c0_i32 : i32 to vector<8x128xi32>
    %23 = arith.cmpi eq, %21, %22 : vector<8x128xi32>
    %c1_i32 = arith.constant 1 : i32
    %24 = vector.broadcast %c1_i32 : i32 to vector<8x128xi32>
    %25 = arith.cmpi eq, %21, %24 : vector<8x128xi32>
    %cst_6 = arith.constant 0.000000e+00 : f32
    %26 = vector.broadcast %20 : f32 to vector<8x128xf32>
    %27 = vector.broadcast %cst_6 : f32 to vector<8x128xf32>
    %28 = arith.select %25, %26, %27 : vector<8x128xi1>, vector<8x128xf32>
    %29 = vector.broadcast %11 : f32 to vector<8x128xf32>
    %30 = arith.select %23, %29, %28 : vector<8x128xi1>, vector<8x128xf32>
    %c0_7 = arith.constant 0 : index
    %c0_8 = arith.constant 0 : index
    %c0_9 = arith.constant 0 : index
    %31 = vector.load %arg4[%c0_7, %c0_8, %c0_9] : memref<1x8x128xf32, #tpu.memory_space<vmem>>, vector<1x8x128xf32>
    %32 = vector.shape_cast %31 : vector<1x8x128xf32> to vector<8x128xf32>
    %33 = vector.shape_cast %30 : vector<8x128xf32> to vector<1x8x128xf32>
    tpu.vector_store %arg4[%c0_7, %c0_8, %c0_9], %33 {strides = array<i32>} : memref<1x8x128xf32, #tpu.memory_space<vmem>>, vector<1x8x128xf32>,
    return
  }
  func.func @transform_0(%arg0: i32) -> (i32, i32) {
    %c0_i32 = arith.constant 0 : i32
    %c0_i32_0 = arith.constant 0 : i32
    return %arg0, %c0_i32 : i32, i32
  }
  func.func @transform_1(%arg0: i32) -> (i32, i32) {
    %c0_i32 = arith.constant 0 : i32
    %c0_i32_0 = arith.constant 0 : i32
    %c0_i32_1 = arith.constant 0 : i32
    return %c0_i32, %c0_i32_0 : i32, i32
  }
  func.func @transform_2(%arg0: i32) -> (i32, i32) {
    %c0_i32 = arith.constant 0 : i32
    %c0_i32_0 = arith.constant 0 : i32
    %c0_i32_1 = arith.constant 0 : i32
    return %c0_i32, %c0_i32_0 : i32, i32
  }
  func.func @transform_3(%arg0: i32) -> (i32, i32, i32) {
    %c0_i32 = arith.constant 0 : i32
    %c0_i32_0 = arith.constant 0 : i32
    %c0_i32_1 = arith.constant 0 : i32
    return %arg0, %c0_i32, %c0_i32_0 : i32, i32, i32
  }
}

</mosaic_0001>

<bundles_post_ra>
// kernel: tpu_custom_call.1
= control target key start
LH: loop header
LB: loop body
LE: loop exit
PB: predicated region body
PF: predicated region fallthrough
CT: control target
= control target key end

     0   :  { %8 = vsyncpa [#allocation3], 0  ;;  %s239_s0 = inlined_call_operand.hbm [shape: f32[8,256], index: 0, kind: input, shape index: {}]   ;;  %s240_s1 = inlined_call_operand.vmem [shape: f32[1,256], index: 1, kind: input, shape index: {}]   ;;  %s241_s2 = inlined_call_operand.vmem [shape: f32[1,256], index: 2, kind: input, shape index: {}]   ;;  %s242_s3 = inlined_call_operand.hbm [shape: f32[1,8,128], index: 3, kind: output, shape index: {}]  }
   0x1   :  { %9 = vsyncpa [#allocation4], 0  ;;  %s179_s12 = smov [#allocation2]   ;;  %s131_s16 = scalar_lea.hbm %s239_s0, 256 }
   0x2   :  { %s16_s13 = sshll.u32 %s179_s12, 4  ;;  %p132_p0 = scmp.ne.s32.totalorder %s239_s0, %s131_s16  ;;  %s17_s13 = int_to_ptr.vmem [resolvable:$true] %s16_s13 }
   0x3   :  { %p135_p1 = scmp.lt.u32.totalorder %s131_s16, %s239_s0 }
   0x5   :  { %p137_p2 = pnand %p135_p1, %p132_p0 }
   0x7   :  { %140 = shalt.err (!%p137_p2)
}
   0x8   :  { %s141_s21 = scalar_lea.vmem %s17_s13, 256  ;;  %p146_p4 = scmp.lt.s32.totalorder %s17_s13, %s17_s13 }
   0x9   :  { %p142_p3 = scmp.ne.s32.totalorder %s17_s13, %s141_s21  ;;  %p147_p5 = scmp.lt.s32.totalorder %s141_s21, %s141_s21 }
   0xb   :  { %p148_p6 = por %p147_p5, %p146_p4 }
   0xd   :  { %p149_p7 = pnand %p148_p6, %p142_p3 }
   0xf   :  { %152 = shalt.err (!%p149_p7)
}
  0x10   :  { %19 = dma.hbm_to_vmem [thread:$0]  %s239_s0, 256, %s17_s13, [#allocation3]  }
  0x11   :  { %175 = dma.done.wait [#allocation3], 256  }
  0x12   :  { %176 = vsyncadd [#allocation3], 4294967040  ;;  %v27_v0 = vld [vmem:[#allocation2] sm:$0xff]  ;;  %s180_s24 = smov 127   ;;  %s181_s25 = smov 112   ;;  %v28_v1 = vld [vmem:[#allocation2 + $0x8] sm:$0xff]  ;;  %v35_v2 = vlaneseq }
  0x13   :  { %67 = vrot.lane.b32.xlu1 %v27_v0, %s180_s24  ;;  %31 = vrot.lane.b32.xlu0 %v27_v0, %s181_s25  ;;  %v30_v9 = vld [vmem:[%s241_s2] sm:$0x3]  ;;  %s182_s2 = smov [#allocation5]  }
  0x14   :  { %v46_v3 = vshrl.u32 %v35_v2, 7  ;;  %v215_v4 = vand.u32 127, %v35_v2  ;;  %v29_v10 = vld [vmem:[%s240_s1] sm:$0x3]  ;;  %s114_s29 = sshll.u32 %s182_s2, 4  ;;  %s115_s29 = int_to_ptr.vmem [resolvable:$true] %s114_s29 }
  0x15   :  { %s153_s4 = scalar_lea.vmem %s115_s29, 128  ;;  %p158_p9 = scmp.lt.s32.totalorder %s115_s29, %s115_s29 }
  0x16   :  { %v47_v7 = vsub.s32 0, %v46_v3  ;;  %v51_v8 = vsub.s32 1, %v46_v3  ;;  %vm71_vm0 = vcmp.lt.s32.totalorder %v215_v4, 127  ;;  %vm37_vm1 = vcmp.lt.s32.totalorder %v215_v4, 112  ;;  %p154_p8 = scmp.ne.s32.totalorder %s115_s29, %s153_s4  ;;  %p159_p10 = scmp.lt.s32.totalorder %s153_s4, %s153_s4 }
  0x17   :  { %69 = vrot.lane.b32.xlu1 %v28_v1, %s180_s24  ;;  %33 = vrot.lane.b32.xlu0 %v28_v1, %s181_s25  ;;  %vm102_vm2 = vcmp.eq.s32.totalorder %v215_v4, 1  ;;  %vm101_vm3 = vcmp.eq.s32.totalorder %v215_v4, 0 }
  0x18   :  { %v82_v13 = vrot.slane %v30_v9, %v47_v7  ;;  %v86_v14 = vrot.slane %v30_v9, %v51_v8  ;;  %v48_v15 = vrot.slane %v29_v10, %v47_v7  ;;  %v52_v16 = vrot.slane %v29_v10, %v51_v8  ;;  %p160_p11 = por %p159_p10, %p158_p9 }
  0x1a   :  { %p161_p12 = pnand %p160_p11, %p154_p8 }
  0x85   :  { %v68_v5 = vpop.permute.xlu1 %67  ;;  %v32_v6 = vpop.permute.xlu0 %31 }
  0x89   :  { %v70_v11 = vpop.permute.xlu1 %69  ;;  %v34_v12 = vpop.permute.xlu0 %33 }
  0x8a   :  { %v72_v17 = vsel %vm71_vm0, %v68_v5, %v70_v11  ;;  %v73_v18 = vsel %vm71_vm0, %v70_v11, %v68_v5  ;;  %v38_v19 = vsel %vm37_vm1, %v32_v6, %v34_v12  ;;  %v39_v20 = vsel %vm37_vm1, %v34_v12, %v32_v6 }
  0x8b   :  { %v74_v21 = vsub.f32 %v72_v17, %v27_v0  ;;  %v75_v22 = vsub.f32 %v73_v18, %v28_v1  ;;  %v40_v23 = vsub.f32 %v38_v19, %v27_v0  ;;  %v41_v24 = vsub.f32 %v39_v20, %v28_v1 }
  0x8d   :  { %v76_v25 = vmul.f32 %v74_v21, %v74_v21  ;;  %v77_v26 = vmul.f32 %v75_v22, %v75_v22  ;;  %v42_v27 = vmul.f32 %v40_v23, %v40_v23  ;;  %v43_v28 = vmul.f32 %v41_v24, %v41_v24 }
  0x8f   :  { %v89_v29 = vmul.f32 %v82_v13, %v76_v25  ;;  %v90_v30 = vmul.f32 %v86_v14, %v77_v26  ;;  %v55_v31 = vmul.f32 %v48_v15, %v42_v27  ;;  %v56_v32 = vmul.f32 %v52_v16, %v43_v28 }
  0x91   :  { %v91_v33 = vadd.f32 %v90_v30, %v89_v29  ;;  %v57_v34 = vadd.f32 %v56_v32, %v55_v31 }
  0x93   :  { %92 = vadd.xlane.f32.xlu1 %v91_v33  ;;  %58 = vadd.xlane.f32.xlu0 %v57_v34 }
 0x120   :  { %v93_v35 = vpop.xlane.xlu1 %92  ;;  %v59_v36 = vpop.xlane.xlu0 %58 }
 0x121   :  { %v94_v37 = vrot.slane %v93_v35, 4  ;;  %v60_v38 = vrot.slane %v59_v36, 4 }
 0x123   :  { %v95_v39 = vadd.f32 %v94_v37, %v93_v35  ;;  %v61_v40 = vadd.f32 %v60_v38, %v59_v36 }
 0x125   :  { %v96_v41 = vrot.slane %v95_v39, 2  ;;  %v62_v42 = vrot.slane %v61_v40, 2 }
 0x127   :  { %v97_v43 = vadd.f32 %v96_v41, %v95_v39  ;;  %v63_v44 = vadd.f32 %v62_v42, %v61_v40 }
 0x129   :  { %v64_v45 = vrot.slane %v63_v44, 1  ;;  %v98_v46 = vrot.slane %v97_v43, 1 }
 0x12b   :  { %v65_v47 = vadd.f32 %v64_v45, %v63_v44  ;;  %v99_v48 = vadd.f32 %v98_v46, %v97_v43 }
 0x12d   :  { %123 = vpush %v65_v47 }
 0x12e   :  { %125 = vpush %v99_v48 }
 0x15e   :  { %s124_s1 = spop %123 }
 0x15f   :  { %v105_v49 = vstv %s124_s1  ;;  %s126_s30 = spop %125 }
 0x160   :  { %v103_v50 = vstv %s126_s30 }
 0x161   :  { %v104_v51 = vsel %vm102_vm2, %v103_v50, 0.0 }
 0x162   :  { %v106_v52 = vsel %vm101_vm3, %v105_v49, %v104_v51 }
 0x163   :  { %107 = vst [vmem:[#allocation5] sm:$0xff] %v106_v52 }
 0x164   :  { %164 = shalt.err (!%p161_p12)
}
 0x165   :  { %s165_s7 = scalar_lea.hbm %s242_s3, 128 }
 0x166   :  { %p166_p13 = scmp.ne.s32.totalorder %s242_s3, %s165_s7  ;;  %p169_p0 = scmp.lt.u32.totalorder %s165_s7, %s242_s3 }
 0x168   :  { %p171_p1 = pnand %p169_p0, %p166_p13 }
 0x16a   :  { %174 = shalt.err (!%p171_p1)
}
 0x16b   :  { %117 = dma.vmem_to_hbm [thread:$0]  %s115_s29, 128, %s242_s3, [#allocation4]  }
 0x16c   :  { %177 = dma.done.wait [#allocation4], 128  }
 0x16d   :  { %178 = vsyncadd [#allocation4], 4294967168 }
 0x16e   :  { %121 = vsyncpa [#allocation3], 1 }
 0x16f   :  { %122 = vsyncpa [#allocation4], 1 }

</bundles_post_ra>
